<compile_context>
chip_gen: v5e
topology: v5e:2x2
jax: 0.10.0
libtpu: 0.0.40
codegen_flags: <defaults>
</compile_context>

<pallas_src>
import functools
import math

import jax
import jax.numpy as jnp
from jax.experimental import pallas as pl
from jax.experimental.pallas import tpu as pltpu


# ----------------------------------------------------------------------------
# VMEM-aware tiling helpers.
# ----------------------------------------------------------------------------
def _vmem_capacity_bytes():
    """Per-core VMEM capacity (v5e/v6e: 128 MiB, v7x: 64 MiB); safe fallback."""
    try:
        info = pltpu.get_tpu_info()
        cap = getattr(info, "vmem_capacity_bytes", None)
        if cap:
            return int(cap)
    except Exception:
        pass
    return 64 * 1024 * 1024


def _level_vmem_bytes(tq, s, c):
    """Working-set estimate for one fused-level grid step (double-buffered)."""
    bf2, f4 = 2, 4
    hyp = 2 * tq * s * bf2          # bf16 hypercorr block (double buffered)
    qf = 2 * tq * c * bf2           # bf16 normalized query block
    sf = 2 * s * c * bf2            # bf16 normalized mask-pooled support block
    sall = 2 * s * c * bf2          # bf16 normalized per-shot support block
    acc = tq * s * f4               # f32 accumulator scratch
    out = 2 * 2 * tq * f4           # f32 output block (double buffered)
    return hyp + qf + sf + sall + acc + out


def _pick_q_tile(q, s, c, batch, budget):
    """Largest TQ that is a multiple of 128 (or == Q) whose working set fits
    the VMEM budget; prefers >= 2 (batch, q-tile) work units for v7x megacore."""
    if q <= 128:
        cands = [q]
    else:
        cands = list(range(128, q + 1, 128))
        if q % 128 != 0:
            cands.append(q)         # full-dim block is also legal
    fits = [t for t in cands if _level_vmem_bytes(t, s, c) <= budget]
    if fits:
        tq = max(fits)
        if batch * (-(-q // tq)) < 2:
            smaller = [t for t in fits if -(-q // t) >= 2]
            if smaller:
                tq = max(smaller)
    else:
        tq = min(cands)             # smallest legal tile; vmem_limit stretches
    return tq


# ----------------------------------------------------------------------------
# Light-weight XLA preprocessing (once per level; halves the dominant HBM
# traffic and removes all per-grid-step normalization work).
# ----------------------------------------------------------------------------
def _l2_normalize_bf16(x, eps=1e-6):
    # NOTE: rsqrt(sum(x^2)+eps) differs negligibly from torch F.normalize.
    x = x.astype(jnp.float32)
    return (x * jax.lax.rsqrt(jnp.sum(x * x, axis=-1, keepdims=True) + eps)
            ).astype(jnp.bfloat16)


def _preprocess_level(hyp, qf, sf, s_shots):
    hyp_red = jnp.mean(hyp.astype(jnp.float32), axis=1).astype(jnp.bfloat16)
    return (hyp_red,                      # [B, Q, S]   bf16 channel-mean
            _l2_normalize_bf16(qf),       # [B, Q, C]   bf16
            _l2_normalize_bf16(sf),       # [B, S, C]   bf16
            _l2_normalize_bf16(s_shots))  # [shot, B, S, C] bf16


# ----------------------------------------------------------------------------
# Kernel 1 (per pyramid level): fused cosine correlations + shot-mean +
# 3-way mix + mean/max over support pixels.
# Grid: (B, Q_tiles, shot) -- shot innermost, accumulated in VMEM scratch.
# Output per level: [B, 2, Q] (row 0 = mean over S, row 1 = max over S).
# ----------------------------------------------------------------------------
def _fused_level_kernel(hyp_ref, qn_ref, sn_ref, ssn_ref, out_ref, acc_ref, *,
                        inv_shot_third):
    # hyp_ref : (1, TQ, S)    bf16 channel-mean hypercorrelation (query tile)
    # qn_ref  : (1, TQ, C)    bf16 pre-normalized query features
    # sn_ref  : (1, S, C)     bf16 pre-normalized mask-pooled support features
    # ssn_ref : (1, 1, S, C)  bf16 pre-normalized support features of this shot
    # out_ref : (1, 2, TQ)    f32  [mean_over_S; max_over_S], Q on lanes
    # acc_ref : VMEM (TQ, S) f32  running mix accumulator (1/3 scale folded in)
    sh = pl.program_id(2)
    last = pl.num_programs(2) - 1

    qn = qn_ref[0]                                                    # [TQ, C] bf16

    @pl.when(sh == 0)
    def _():
        hyp = hyp_ref[0].astype(jnp.float32)                          # [TQ, S]
        c = jax.lax.dot_general(qn, sn_ref[0], (((1,), (1,)), ((), ())),
                                preferred_element_type=jnp.float32)   # [TQ, S]
        # 1/3 mix scale folded into the init (and per-shot term below).
        acc_ref[...] = (hyp + jnp.maximum(c, 0.0)) * (1.0 / 3.0)

    cs = jax.lax.dot_general(qn, ssn_ref[0, 0], (((1,), (1,)), ((), ())),
                             preferred_element_type=jnp.float32)      # [TQ, S]
    acc_ref[...] = acc_ref[...] + jnp.maximum(cs, 0.0) * inv_shot_third

    @pl.when(sh == last)
    def _():
        mixed = acc_ref[...]                                          # [TQ, S]
        mean_q = jnp.mean(mixed, axis=-1, keepdims=True)              # [TQ, 1]
        max_q = jnp.max(mixed, axis=-1, keepdims=True)                # [TQ, 1]
        # Two lane-dense row stores; no concatenate of the stats.
        out_ref[0, 0:1, :] = jnp.transpose(mean_q, (1, 0))
        out_ref[0, 1:2, :] = jnp.transpose(max_q, (1, 0))


def fused_level_features(hyp_red, qn, sn, ssn):
    """hyp_red [B,Q,S] bf16, qn [B,Q,C] bf16, sn [B,S,C] bf16,
       ssn [shot,B,S,C] bf16  ->  [B, 2, Q] f32 (mean/max over S)."""
    B, Q, S = hyp_red.shape
    C = qn.shape[-1]
    n_shot = ssn.shape[0]

    cap = _vmem_capacity_bytes()
    budget = int(cap * 0.7)                 # ~45 MiB on v7x, ~90 MiB on v5e/v6e
    TQ = _pick_q_tile(Q, S, C, B, budget)
    n_qt = -(-Q // TQ)
    needed = _level_vmem_bytes(TQ, S, C)
    vmem_limit = int(min(cap * 0.9, max(needed * 1.25, 32 * 1024 * 1024)))

    kernel = functools.partial(_fused_level_kernel,
                               inv_shot_third=1.0 / (3.0 * float(n_shot)))
    return pl.pallas_call(
        kernel,
        out_shape=jax.ShapeDtypeStruct((B, 2, Q), jnp.float32),
        grid_spec=pltpu.PrefetchScalarGridSpec(
            num_scalar_prefetch=0,
            grid=(B, n_qt, n_shot),
            in_specs=[
                pl.BlockSpec((1, TQ, S), lambda b, qt, sh: (b, qt, 0)),
                pl.BlockSpec((1, TQ, C), lambda b, qt, sh: (b, qt, 0)),
                pl.BlockSpec((1, S, C), lambda b, qt, sh: (b, 0, 0)),
                pl.BlockSpec((1, 1, S, C), lambda b, qt, sh: (sh, b, 0, 0)),
            ],
            out_specs=pl.BlockSpec((1, 2, TQ), lambda b, qt, sh: (b, 0, qt)),
            scratch_shapes=[pltpu.VMEM((TQ, S), jnp.float32)],
        ),
        compiler_params=pltpu.CompilerParams(
            dimension_semantics=("parallel", "parallel", "arbitrary"),
            vmem_limit_bytes=vmem_limit,
        ),
    )(hyp_red, qn, sn, ssn)


# ----------------------------------------------------------------------------
# Kernel 2: tiny 2-layer MLP decoder.  Consumes the per-level [B,2,Q] features
# directly (no XLA concat); one grid step per batch, weights resident, Q kept
# on lanes.  Output logits: [B, 2, Q] (lane-dense stores).
# ----------------------------------------------------------------------------
def _mlp_kernel(*refs, n_levels):
    f_refs = refs[:n_levels]                               # each (1, 2, Q) f32
    w1_ref, b1_ref, w2_ref, b2_ref, o_ref = refs[n_levels:n_levels + 5]
    w1 = w1_ref[...]                                       # [2L, H]
    h = None
    for l in range(n_levels):
        f = f_refs[l][0]                                   # [2, Q]
        wl = w1[2 * l:2 * l + 2, :]                        # [2, H]
        part = jax.lax.dot_general(wl, f, (((0,), (0,)), ((), ())),
                                   preferred_element_type=jnp.float32)  # [H, Q]
        h = part if h is None else h + part
    h = jnp.maximum(h + b1_ref[...], 0.0)                  # [H, Q]
    logits = jax.lax.dot_general(w2_ref[...], h, (((0,), (0,)), ((), ())),
                                 preferred_element_type=jnp.float32)    # [2, Q]
    o_ref[0] = logits + b2_ref[...]


def decode_mlp(level_feats, w1, b1, w2, b2):
    """level_feats: list of L arrays [B, 2, Q] -> logits [B, 2, Q]."""
    L = len(level_feats)
    B, _, Q = level_feats[0].shape
    H = w1.shape[1]
    kernel = functools.partial(_mlp_kernel, n_levels=L)
    in_specs = ([pl.BlockSpec((1, 2, Q), lambda b: (b, 0, 0)) for _ in range(L)]
                + [pl.BlockSpec((2 * L, H), lambda b: (0, 0)),
                   pl.BlockSpec((H, 1), lambda b: (0, 0)),
                   pl.BlockSpec((H, 2), lambda b: (0, 0)),
                   pl.BlockSpec((2, 1), lambda b: (0, 0))])
    return pl.pallas_call(
        kernel,
        out_shape=jax.ShapeDtypeStruct((B, 2, Q), jnp.float32),
        grid_spec=pltpu.PrefetchScalarGridSpec(
            num_scalar_prefetch=0,
            grid=(B,),
            in_specs=in_specs,
            out_specs=pl.BlockSpec((1, 2, Q), lambda b: (b, 0, 0)),
        ),
        compiler_params=pltpu.CompilerParams(
            dimension_semantics=("parallel",),
            vmem_limit_bytes=32 * 1024 * 1024,
        ),
    )(*level_feats, w1, b1, w2, b2)


# ----------------------------------------------------------------------------
# VATLearner (JAX / Pallas)
# ----------------------------------------------------------------------------
class VATLearnerPallas:
    def __init__(self, inch, shot, hidden=32, seed=0):
        self.inch = tuple(inch)
        self.shot = shot
        L = len(self.inch)
        key = jax.random.PRNGKey(seed)
        k1, k2 = jax.random.split(key, 2)
        # Deterministic synthetic decoder weights.  Row layout of w1: rows
        # (2l, 2l+1) correspond to (mean, max) of pyramid level l, so kernel 2
        # can consume per-level features without any HBM concat.
        self.w1 = jax.random.normal(k1, (2 * L, hidden), jnp.float32) * 0.1
        self.b1 = jnp.zeros((hidden, 1), jnp.float32)
        self.w2 = jax.random.normal(k2, (hidden, 2), jnp.float32) * 0.1
        self.b2 = jnp.zeros((2, 1), jnp.float32)

    def __call__(self, hypercorr_pyramid, query_feats, support_feats,
                 all_support_feats, istrain=True):
        # hypercorr_pyramid: list of L tensors [B, inch[l], Q, S]
        # query_feats:       list of L tensors [B, Q, C]
        # support_feats:     list of L tensors [B, S, C]  (mask-pooled supports)
        # all_support_feats: list over `shot` of per-level support-feature lists
        # istrain: unused in the inference path
        # TODO(synk): training-time dropout / aux losses of OurModel not modeled.
        L = len(hypercorr_pyramid)
        B, _, Q, S = hypercorr_pyramid[0].shape
        n_shot = len(all_support_feats)

        level_feats = []
        for l in range(L):
            s_shots = jnp.stack(
                [all_support_feats[s][l] for s in range(n_shot)], axis=0)
            hyp_red, qn, sn, ssn = _preprocess_level(
                hypercorr_pyramid[l], query_feats[l], support_feats[l], s_shots)
            level_feats.append(fused_level_features(hyp_red, qn, sn, ssn))

        logits = decode_mlp(level_feats, self.w1, self.b1, self.w2, self.b2)

        Hq = Wq = int(round(math.sqrt(Q)))
        if Hq * Wq != Q:
            raise ValueError(
                f"query spatial size {Q} is not a square; pass Hq/Wq explicitly")
        # NCHW output: pure reshape, no trailing transpose.
        return logits.reshape(B, 2, Hq, Wq)


if __name__ == "__main__":
    # Small synthetic shapes consistent with the VAT forward signature.
    B, C = 2, 32
    Hq = Wq = 8
    Hs = Ws = 8
    Q, S = Hq * Wq, Hs * Ws
    inch = [4, 4, 4]        # hypercorr channels per pyramid level
    L = len(inch)
    shot = 2                # exercise the shot-accumulation grid axis

    key = jax.random.PRNGKey(0)
    keys = jax.random.split(key, 3 * L + shot * L)

    hypercorr_pyramid = [
        jax.random.uniform(keys[l], (B, inch[l], Q, S), jnp.float32)
        for l in range(L)
    ]
    query_feats = [
        jax.random.normal(keys[L + l], (B, Q, C), jnp.float32) for l in range(L)
    ]
    support_feats = [
        jax.random.normal(keys[2 * L + l], (B, S, C), jnp.float32)
        for l in range(L)
    ]
    all_support_feats = [
        [jax.random.normal(keys[3 * L + s_idx * L + l], (B, S, C), jnp.float32)
         for l in range(L)]
        for s_idx in range(shot)
    ]

    learner = VATLearnerPallas(inch, shot)
    out = learner(hypercorr_pyramid, query_feats, support_feats,
                  all_support_feats, istrain=True)
    out = jax.block_until_ready(out)
    assert out.shape == (B, 2, Hq, Wq), out.shape
    assert jnp.all(jnp.isfinite(out))
    print("KERNEL_OK")
</pallas_src>

<mosaic_0001>
module attributes {stable_mosaic.version = 11 : i64} {
  func.func @_fused_level_kernel(%arg0: i32, %arg1: i32, %arg2: i32, %arg3: memref<1x64x64xbf16, #tpu.memory_space<vmem>>, %arg4: memref<1x64x32xbf16, #tpu.memory_space<vmem>>, %arg5: memref<1x64x32xbf16, #tpu.memory_space<vmem>>, %arg6: memref<1x1x64x32xbf16, #tpu.memory_space<vmem>>, %arg7: memref<1x2x64xf32, #tpu.memory_space<vmem>>, %arg8: memref<64x64xf32, #tpu.memory_space<vmem>>) attributes {dimension_semantics = [#tpu.dimension_semantics<parallel>, #tpu.dimension_semantics<parallel>, #tpu.dimension_semantics<arbitrary>], iteration_bounds = array<i64: 2, 1, 2>, scalar_prefetch = 0 : i64, scratch_operands = 1 : i64, tpu.core_type = #tpu.core_type<tc>, window_params = [{transform_indices = @transform_0, window_bounds = array<i64: 1, 64, 64>}, {transform_indices = @transform_1, window_bounds = array<i64: 1, 64, 32>}, {transform_indices = @transform_2, window_bounds = array<i64: 1, 64, 32>}, {transform_indices = @transform_3, window_bounds = array<i64: 1, 1, 64, 32>}, {transform_indices = @transform_4, window_bounds = array<i64: 1, 2, 64>}]} {
    %c0 = arith.constant 0 : index
    %c0_0 = arith.constant 0 : index
    %c0_1 = arith.constant 0 : index
    %0 = vector.load %arg4[%c0, %c0_0, %c0_1] : memref<1x64x32xbf16, #tpu.memory_space<vmem>>, vector<1x64x32xbf16>
    %1 = vector.shape_cast %0 : vector<1x64x32xbf16> to vector<64x32xbf16>
    %c0_i32 = arith.constant 0 : i32
    %2 = arith.cmpi eq, %arg2, %c0_i32 : i32
    %3 = arith.extui %2 : i1 to i32
    %c0_i32_2 = arith.constant 0 : i32
    %4 = arith.cmpi ne, %3, %c0_i32_2 : i32
    scf.if %4 {
      %c0_14 = arith.constant 0 : index
      %c0_15 = arith.constant 0 : index
      %c0_16 = arith.constant 0 : index
      %18 = vector.load %arg3[%c0_14, %c0_15, %c0_16] : memref<1x64x64xbf16, #tpu.memory_space<vmem>>, vector<1x64x64xbf16>
      %19 = vector.shape_cast %18 : vector<1x64x64xbf16> to vector<64x64xbf16>
      %20 = arith.extf %19 : vector<64x64xbf16> to vector<64x64xf32>
      %c0_17 = arith.constant 0 : index
      %c0_18 = arith.constant 0 : index
      %c0_19 = arith.constant 0 : index
      %21 = vector.load %arg5[%c0_17, %c0_18, %c0_19] : memref<1x64x32xbf16, #tpu.memory_space<vmem>>, vector<1x64x32xbf16>
      %22 = vector.shape_cast %21 : vector<1x64x32xbf16> to vector<64x32xbf16>
      %cst_20 = arith.constant dense<0.000000e+00> : vector<64x64xf32>
      %23 = tpu.matmul %1, %22, %cst_20 {dimension_numbers = #tpu.dot_dimension_numbers<[1], [1], [0], [0], [0, 0, 1, 0], [], []>} : vector<64x32xbf16>, vector<64x32xbf16>, vector<64x64xf32> -> vector<64x64xf32>
      %cst_21 = arith.constant 0.000000e+00 : f32
      %24 = vector.broadcast %cst_21 : f32 to vector<64x64xf32>
      %25 = arith.maximumf %23, %24 : vector<64x64xf32>
      %26 = arith.addf %20, %25 : vector<64x64xf32>
      %cst_22 = arith.constant 0.333333343 : f32
      %27 = vector.broadcast %cst_22 : f32 to vector<64x64xf32>
      %28 = arith.mulf %26, %27 : vector<64x64xf32>
      %c0_23 = arith.constant 0 : index
      %c0_24 = arith.constant 0 : index
      %29 = vector.load %arg8[%c0_23, %c0_24] : memref<64x64xf32, #tpu.memory_space<vmem>>, vector<64x64xf32>
      tpu.vector_store %arg8[%c0_23, %c0_24], %28 {strides = array<i32>} : memref<64x64xf32, #tpu.memory_space<vmem>>, vector<64x64xf32>,
    } else {
    }
    %c0_3 = arith.constant 0 : index
    %c0_4 = arith.constant 0 : index
    %c0_5 = arith.constant 0 : index
    %c0_6 = arith.constant 0 : index
    %5 = vector.load %arg6[%c0_3, %c0_4, %c0_5, %c0_6] : memref<1x1x64x32xbf16, #tpu.memory_space<vmem>>, vector<1x1x64x32xbf16>
    %6 = vector.shape_cast %5 : vector<1x1x64x32xbf16> to vector<64x32xbf16>
    %cst = arith.constant dense<0.000000e+00> : vector<64x64xf32>
    %7 = tpu.matmul %1, %6, %cst {dimension_numbers = #tpu.dot_dimension_numbers<[1], [1], [0], [0], [0, 0, 1, 0], [], []>} : vector<64x32xbf16>, vector<64x32xbf16>, vector<64x64xf32> -> vector<64x64xf32>
    %c0_7 = arith.constant 0 : index
    %c0_8 = arith.constant 0 : index
    %8 = vector.load %arg8[%c0_7, %c0_8] : memref<64x64xf32, #tpu.memory_space<vmem>>, vector<64x64xf32>
    %cst_9 = arith.constant 0.000000e+00 : f32
    %9 = vector.broadcast %cst_9 : f32 to vector<64x64xf32>
    %10 = arith.maximumf %7, %9 : vector<64x64xf32>
    %cst_10 = arith.constant 0.166666672 : f32
    %11 = vector.broadcast %cst_10 : f32 to vector<64x64xf32>
    %12 = arith.mulf %10, %11 : vector<64x64xf32>
    %13 = arith.addf %8, %12 : vector<64x64xf32>
    %c0_11 = arith.constant 0 : index
    %c0_12 = arith.constant 0 : index
    %14 = vector.load %arg8[%c0_11, %c0_12] : memref<64x64xf32, #tpu.memory_space<vmem>>, vector<64x64xf32>
    tpu.vector_store %arg8[%c0_11, %c0_12], %13 {strides = array<i32>} : memref<64x64xf32, #tpu.memory_space<vmem>>, vector<64x64xf32>,
    %c1_i32 = arith.constant 1 : i32
    %15 = arith.cmpi eq, %arg2, %c1_i32 : i32
    %16 = arith.extui %15 : i1 to i32
    %c0_i32_13 = arith.constant 0 : i32
    %17 = arith.cmpi ne, %16, %c0_i32_13 : i32
    scf.if %17 {
      %c0_14 = arith.constant 0 : index
      %c0_15 = arith.constant 0 : index
      %18 = vector.load %arg8[%c0_14, %c0_15] : memref<64x64xf32, #tpu.memory_space<vmem>>, vector<64x64xf32>
      %cst_16 = arith.constant dense<0.000000e+00> : vector<64xf32>
      %19 = vector.multi_reduction <add>, %18, %cst_16 [1] : vector<64x64xf32> to vector<64xf32>
      %20 = vector.shape_cast %19 : vector<64xf32> to vector<64x1xf32>
      %cst_17 = arith.constant 6.400000e+01 : f32
      %21 = vector.broadcast %cst_17 : f32 to vector<64x1xf32>
      %22 = arith.divf %20, %21 : vector<64x1xf32>
      %cst_18 = arith.constant dense<0xFF800000> : vector<64xf32>
      %23 = vector.multi_reduction <maximumf>, %18, %cst_18 [1] : vector<64x64xf32> to vector<64xf32>
      %24 = vector.shape_cast %23 : vector<64xf32> to vector<64x1xf32>
      %25 = tpu.transpose %22, [1, 0] : vector<64x1xf32> -> vector<1x64xf32>
      %c0_19 = arith.constant 0 : index
      %c0_20 = arith.constant 0 : index
      %c0_21 = arith.constant 0 : index
      %26 = vector.load %arg7[%c0_19, %c0_20, %c0_21] : memref<1x2x64xf32, #tpu.memory_space<vmem>>, vector<1x1x64xf32>
      %27 = vector.shape_cast %26 : vector<1x1x64xf32> to vector<1x64xf32>
      %28 = vector.shape_cast %25 : vector<1x64xf32> to vector<1x1x64xf32>
      tpu.vector_store %arg7[%c0_19, %c0_20, %c0_21], %28 {strides = array<i32>} : memref<1x2x64xf32, #tpu.memory_space<vmem>>, vector<1x1x64xf32>,
      %29 = tpu.transpose %24, [1, 0] : vector<64x1xf32> -> vector<1x64xf32>
      %c0_22 = arith.constant 0 : index
      %c1 = arith.constant 1 : index
      %c0_23 = arith.constant 0 : index
      %30 = vector.load %arg7[%c0_22, %c1, %c0_23] : memref<1x2x64xf32, #tpu.memory_space<vmem>>, vector<1x1x64xf32>
      %31 = vector.shape_cast %30 : vector<1x1x64xf32> to vector<1x64xf32>
      %32 = vector.shape_cast %29 : vector<1x64xf32> to vector<1x1x64xf32>
      tpu.vector_store %arg7[%c0_22, %c1, %c0_23], %32 {strides = array<i32>} : memref<1x2x64xf32, #tpu.memory_space<vmem>>, vector<1x1x64xf32>,
    } else {
    }
    return
  }
  func.func @transform_0(%arg0: i32, %arg1: i32, %arg2: i32) -> (i32, i32, i32) {
    %c0_i32 = arith.constant 0 : i32
    %c0_i32_0 = arith.constant 0 : i32
    return %arg0, %arg1, %c0_i32 : i32, i32, i32
  }
  func.func @transform_1(%arg0: i32, %arg1: i32, %arg2: i32) -> (i32, i32, i32) {
    %c0_i32 = arith.constant 0 : i32
    %c0_i32_0 = arith.constant 0 : i32
    return %arg0, %arg1, %c0_i32 : i32, i32, i32
  }
  func.func @transform_2(%arg0: i32, %arg1: i32, %arg2: i32) -> (i32, i32, i32) {
    %c0_i32 = arith.constant 0 : i32
    %c0_i32_0 = arith.constant 0 : i32
    %c0_i32_1 = arith.constant 0 : i32
    return %arg0, %c0_i32, %c0_i32_0 : i32, i32, i32
  }
  func.func @transform_3(%arg0: i32, %arg1: i32, %arg2: i32) -> (i32, i32, i32, i32) {
    %c0_i32 = arith.constant 0 : i32
    %c0_i32_0 = arith.constant 0 : i32
    %c0_i32_1 = arith.constant 0 : i32
    return %arg2, %arg0, %c0_i32, %c0_i32_0 : i32, i32, i32, i32
  }
  func.func @transform_4(%arg0: i32, %arg1: i32, %arg2: i32) -> (i32, i32, i32) {
    %c0_i32 = arith.constant 0 : i32
    %c0_i32_0 = arith.constant 0 : i32
    return %arg0, %c0_i32, %arg1 : i32, i32, i32
  }
}

</mosaic_0001>

<bundles_post_ra>
// kernel: tpu_custom_call.1
= control target key start
LH: loop header
LB: loop body
LE: loop exit
PB: predicated region body
PF: predicated region fallthrough
CT: control target
= control target key end

     0   :  { %9 = vsyncpa [#allocation4], 0  ;;  %s1501_s0 = inlined_call_operand.vmem [shape: bf16[2,64,64], index: 0, kind: input, shape index: {}]   ;;  %s1502_s1 = inlined_call_operand.vmem [shape: bf16[2,64,32], index: 1, kind: input, shape index: {}]   ;;  %s1503_s2 = inlined_call_operand.vmem [shape: bf16[2,64,32], index: 2, kind: input, shape index: {}]   ;;  %s1504_s3 = inlined_call_operand.vmem [shape: bf16[2,2,64,32], index: 3, kind: input, shape index: {}]   ;;  %s1505_s4 = inlined_call_operand.hbm [shape: f32[2,2,64], index: 4, kind: output, shape index: {}]  }
   0x1   :  { %11 = vsyncpa [#allocation4 + $0x1], 0  ;;  %s1272_s15 = smov 0   ;;  %s1274_s16 = smov 0  }
   0x2   :  { %s1276_s17 = smov 0   ;;  %s1278_s18 = smov 0  }
   0x3   :  { %s1280_s19 = smov 0   ;;  %s1282_s20 = smov 0  }
   0x4   :  { %s1284_s21 = smov 0   ;;  %s1286_s22 = smov 0  }
   0x5 LB: > { %1509 = sst [smem:[#allocation6_spill]] %s1240_s21  ;;  %s920_s23 = sadd.s32 4294967295, %s1244_s22   ;;  %s1244_s22 = sphi %s1286_s22, %s17_s22   ;;  %s1240_s21 = sphi %s1284_s21, %s1517_s21   ;;  %s1236_s20 = sphi %s1282_s20, %s1522_s20   ;;  %s1232_s19 = sphi %s1280_s19, %s1515_s19   ;;  %s1228_s18 = sphi %s1278_s18, %s1521_s18   ;;  %s1224_s17 = sphi %s1276_s17, %s1520_s17   ;;  %s1220_s16 = sphi %s1274_s16, %s1519_s16   ;;  %s1216_s15 = sphi %s1272_s15, %s1518_s15  }
   0x6   : > { %s921_s24 = sadd.s32 4294967294, %s1244_s22   ;;  %s29_s25 = sadd.s32 1, %s1236_s20 }
   0x7   : > { %p30_p0 = scmp.ge.s32.totalorder %s29_s25, 2  ;;  %s36_s26 = sadd.s32 1, %s1240_s21 }
   0x8   : > { %p165_p1 = scmp.ne.s32.totalorder %s1224_s17, %s1220_s16  ;;  %p166_p2 = scmp.eq.s32.totalorder %s920_s23, 3 }
   0x9   : > { %s1524_s25 = smov (%p30_p0, %s29_s25), 0  ;;  %s1526_s26 = smov (!%p30_p0, %s36_s26), %s1240_s21 }
   0xa   : > { %1510 = sst [smem:[#allocation7_spill]] %s1524_s25  ;;  %p1321_p3 = por %p166_p2, %p165_p1 }
   0xb   : > { %p171_p4 = scmp.ne.s32.totalorder %s1220_s16, %s1216_s15  ;;  %p38_p5 = scmp.ge.s32.totalorder %s1526_s26, 2 }
   0xc   : > { %p172_p6 = scmp.eq.s32.totalorder %s921_s24, 3  ;;  %p924_p7 = scmp.ge.s32.totalorder %s1244_s22, 1 }
   0xd   : > { %p236_p8 = scmp.lt.s32.totalorder %s1244_s22, 5  ;;  %s1528_s26 = smov (%p38_p5, %s1526_s26), 0 }
   0xe   : > { %1512 = sst [smem:[#allocation8_spill]] %s1528_s26  ;;  %p1331_p9 = por %p172_p6, %p171_p4 }
   0xf   : > { %p237_p10 = pnand %p924_p7, %p236_p8  ;;  %s150_s29 = ssub.s32 %s1240_s21, %s1528_s26 }
  0x10   : > { %s155_s30 = sadd.s32 1, %s1224_s17  ;;  %p153_p11 = scmp.eq.s32.totalorder %s150_s29, 0 }
  0x11   : > { %240 = sbr.rel (%p237_p10) target bundleno = 705 (0x2c1), region = 36  ;;  %s1507_s6 = sand.u32 (!%p237_p10), 1, %s1220_s16  }
  0x12   : > { %s1339_s5 = scalar_select %p153_p11, %s1224_s17, %s155_s30  }
  0x13   : > { %p290_p12 = scmp.lt.s32.totalorder (!%p237_p10), %s1232_s19, 1  ;;  %s925_s7 = sshll.u32 (!%p237_p10), %s1507_s6, 1 }
  0x14   : > { %p314_p13 = scmp.lt.s32.totalorder (!%p237_p10), %s1228_s18, 1  ;;  %p935_p0 = scmp.ne.s32.totalorder (!%p237_p10), %s1228_s18, 0 }
  0x16   : > { %s291_s8 = scalar_select %p290_p12, %s1232_s19, 1 }
  0x17   : > { %s315_s9 = scalar_select %p314_p13, %s1228_s18, 1 }
  0x18   : > { %s1013_s10 = sshll.u32 %s291_s8, 5  ;;  %s932_s11 = sshll.u32 %s291_s8, 3 }
  0x19   : > { %s1351_s14 = scalar_lea.vmem %s1501_s0, %s1013_s10  ;;  %s307_s29 = scalar_lea.vmem %s1502_s1, %s1013_s10 }
  0x1a   : > { %s1359_s25 = scalar_lea.vmem %s1503_s2, %s1013_s10  ;;  %s933_s6 = sshll.u32 %s315_s9, 4  ;;  %v1361_v0 = vld [vmem:[%s307_s29] sm:$0xf]  ;;  %v1363_v2 = vld [vmem:[%s307_s29] sm:$0xf0] }
  0x1b   : > { %v938_v1 = vld [vmem:[%s307_s29] sm:$0xf]  ;;  %s320_s21 = sadd.s32 %s933_s6, %s932_s11  ;;  %v1017_v3 = vld [vmem:[%s307_s29] sm:$0xf0]  ;;  %v1365_v4 = vld [vmem:[%s307_s29 + $0x8] sm:$0xf] }
  0x1c   : > { %s934_s8 = sshll.u32 %s320_s21, 2  ;;  %v942_v5 = vld [vmem:[%s307_s29 + $0x8] sm:$0xf]  ;;  %v1367_v6 = vld [vmem:[%s307_s29 + $0x8] sm:$0xf0]  ;;  %s1382_s21 = scalar_lea.vmem [#allocation3], %s925_s7 }
  0x1d   : > { %s1372_s26 = scalar_lea.vmem %s1504_s3, %s934_s8  ;;  %v1019_v7 = vld [vmem:[%s307_s29 + $0x8] sm:$0xf0]  ;;  %v1374_v8 = vld [vmem:[%s307_s29 + $0x10] sm:$0xf]  ;;  %v1376_v10 = vld [vmem:[%s307_s29 + $0x10] sm:$0xf0] }
  0x1e   : > { %v946_v9 = vld [vmem:[%s307_s29 + $0x10] sm:$0xf]  ;;  %v1021_v11 = vld [vmem:[%s307_s29 + $0x10] sm:$0xf0]  ;;  %v1378_v12 = vld [vmem:[%s307_s29 + $0x18] sm:$0xf] }
  0x1f   : > { %v950_v13 = vld [vmem:[%s307_s29 + $0x18] sm:$0xf]  ;;  %v1380_v14 = vld [vmem:[%s307_s29 + $0x18] sm:$0xf0]  ;;  %335 = sbr.rel (%p935_p0) target bundleno = 218 (0xda), region = 40 }
  0x20   : > { %v1023_v15 = vld [vmem:[%s307_s29 + $0x18] sm:$0xf0] }
  0x24   : > { %v1027_v16 = vld [vmem:[%s1359_s25 + $0x18] sm:$0xff]  ;;  %vm400_vm0 = vcmask 261120   ;;  %v1026_v18 = vld [vmem:[%s1359_s25 + $0x10] sm:$0xff]  ;;  %v1025_v20 = vld [vmem:[%s1359_s25 + $0x8] sm:$0xff]  ;;  %v939_v24 = vor.u32 %v1017_v3, %v938_v1  ;;  %v943_v25 = vor.u32 %v1019_v7, %v942_v5  ;;  %v947_v26 = vor.u32 %v1021_v11, %v946_v9 }
  0x25   : > { %v423_v17 = vsel %vm400_vm0, %v1027_v16, 0  ;;  %v420_v19 = vsel %vm400_vm0, %v1026_v18, 0  ;;  %v417_v21 = vsel %vm400_vm0, %v1025_v20, 0  ;;  %v1024_v22 = vld [vmem:[%s1359_s25] sm:$0xff]  ;;  %v951_v27 = vor.u32 %v1023_v15, %v950_v13  ;;  %v1048_v29 = vld [vmem:[%s1351_s14 + $0x8] sm:$0xff]   ;;  %v1049_v38 = vld [vmem:[%s1351_s14 + $0x10] sm:$0xff]  }
  0x26   : > { %429 = vmatpush.bf16.xpose.msra.mxu0 %v423_v17  ;;  %1051 = vmatpush.bf16.xpose.msra.mxu1 %v423_v17  ;;  %v414_v23 = vsel %vm400_vm0, %v1024_v22, 0  ;;  %v1033_v28 = vld [vmem:[%s1351_s14] sm:$0xff]   ;;  %v1038_v31 = vunpack.c.l.bf16 %v1048_v29  ;;  %v1050_v39 = vld [vmem:[%s1351_s14 + $0x18] sm:$0xff]   ;;  %vm478_vm1 = vcmask 523264   ;;  %v1042_v42 = vunpack.c.l.bf16 %v1049_v38 }
  0x27   : > { %1052 = vmatpush.bf16.xpose.msra.mxu2 %v423_v17  ;;  %1053 = vmatpush.bf16.xpose.msra.mxu3 %v423_v17  ;;  %v1034_v30 = vunpack.c.l.bf16 %v1033_v28  ;;  %v1046_v43 = vunpack.c.l.bf16 %v1050_v39  ;;  %v1035_v46 = vunpack.c.h.bf16 %v1033_v28  ;;  %v1039_v47 = vunpack.c.h.bf16 %v1048_v29 }
  0x28   : > { %v1043_v62 = vunpack.c.h.bf16 %v1049_v38  ;;  %v1047_v63 = vunpack.c.h.bf16 %v1050_v39 }
  0x2e   : > { %430 = vmatpush.bf16.xpose.msra.mxu0 %v420_v19  ;;  %1054 = vmatpush.bf16.xpose.msra.mxu1 %v420_v19 }
  0x2f   : > { %1055 = vmatpush.bf16.xpose.msra.mxu2 %v420_v19  ;;  %1056 = vmatpush.bf16.xpose.msra.mxu3 %v420_v19 }
  0x36   : > { %431 = vmatpush.bf16.xpose.msra.mxu0 %v417_v21  ;;  %1057 = vmatpush.bf16.xpose.msra.mxu1 %v417_v21 }
  0x37   : > { %1058 = vmatpush.bf16.xpose.msra.mxu2 %v417_v21  ;;  %1059 = vmatpush.bf16.xpose.msra.mxu3 %v417_v21 }
  0x3e   : > { %432 = vmatpush.bf16.xpose.msra.mxu0 %v414_v23  ;;  %1060 = vmatpush.bf16.xpose.msra.mxu1 %v414_v23 }
  0x3f   : > { %1061 = vmatpush.bf16.xpose.msra.mxu2 %v414_v23  ;;  %1062 = vmatpush.bf16.xpose.msra.mxu3 %v414_v23 }
  0x45   : > { %968 = vmatmul.msk.bf16.vlgmr.msra.gmra.mxu0 %vm400_vm0, %v939_v24  ;;  %969 = vmatmul.msk.bf16.vlgmr.msra.gmra.mxu1 %vm400_vm0, %v943_v25 }
  0x46   : > { %970 = vmatmul.msk.bf16.vlgmr.msra.gmra.mxu2 %vm400_vm0, %v947_v26  ;;  %971 = vmatmul.msk.bf16.vlgmr.msra.gmra.mxu3 %vm400_vm0, %v951_v27 }
  0xc2   : > { %v434_v32 = vpop.f32.mrf.mxu0  ;;  %v439_v33 = vpop.f32.mrf.mxu1 }
  0xc3   : > { %v454_v34 = vmax.f32 %v434_v32, 0.0  ;;  %v456_v35 = vmax.f32 %v439_v33, 0.0 }
  0xc5   : > { %v462_v36 = vadd.f32 %v1034_v30, %v454_v34  ;;  %v464_v37 = vadd.f32 %v1038_v31, %v456_v35 }
  0xc7   : > { %v470_v40 = vmul.f32 0.33333334, %v462_v36  ;;  %v472_v41 = vmul.f32 0.33333334, %v464_v37 }
  0xc9   : > { %479 = vst.msk [vmem:[#allocation2] sm:$0xff] %vm478_vm1, %v470_v40  ;;  %v444_v44 = vpop.f32.mrf.mxu2  ;;  %v449_v45 = vpop.f32.mrf.mxu3 }
  0xca   : > { %481 = vst.msk [vmem:[#allocation2 + $0x10] sm:$0xff] %vm478_vm1, %v472_v41  ;;  %v458_v48 = vmax.f32 %v444_v44, 0.0  ;;  %v460_v49 = vmax.f32 %v449_v45, 0.0  ;;  %v436_v50 = vpop.f32.mrf.mxu0  ;;  %v441_v51 = vpop.f32.mrf.mxu1 }
  0xcb   : > { %v455_v52 = vmax.f32 %v436_v50, 0.0  ;;  %v457_v53 = vmax.f32 %v441_v51, 0.0 }
  0xcc   : > { %v466_v54 = vadd.f32 %v1042_v42, %v458_v48  ;;  %v468_v55 = vadd.f32 %v1046_v43, %v460_v49 }
  0xcd   : > { %v463_v56 = vadd.f32 %v1035_v46, %v455_v52  ;;  %v465_v57 = vadd.f32 %v1039_v47, %v457_v53 }
  0xce   : > { %v474_v58 = vmul.f32 0.33333334, %v466_v54  ;;  %v476_v59 = vmul.f32 0.33333334, %v468_v55 }
  0xcf   : > { %v471_v60 = vmul.f32 0.33333334, %v463_v56  ;;  %v473_v61 = vmul.f32 0.33333334, %v465_v57 }
  0xd0   : > { %483 = vst.msk [vmem:[#allocation2 + $0x20] sm:$0xff] %vm478_vm1, %v474_v58 }
  0xd1   : > { %485 = vst.msk [vmem:[#allocation2 + $0x30] sm:$0xff] %vm478_vm1, %v476_v59  ;;  %v446_v1 = vpop.f32.mrf.mxu2  ;;  %v451_v3 = vpop.f32.mrf.mxu3 }
  0xd2   : > { %480 = vst.msk [vmem:[#allocation2 + $0x8] sm:$0xff] %vm478_vm1, %v471_v60  ;;  %v459_v5 = vmax.f32 %v446_v1, 0.0  ;;  %v461_v7 = vmax.f32 %v451_v3, 0.0 }
  0xd3   : > { %482 = vst.msk [vmem:[#allocation2 + $0x18] sm:$0xff] %vm478_vm1, %v473_v61 }
  0xd4   : > { %v467_v9 = vadd.f32 %v1043_v62, %v459_v5  ;;  %v469_v11 = vadd.f32 %v1047_v63, %v461_v7 }
  0xd6   : > { %v475_v13 = vmul.f32 0.33333334, %v467_v9  ;;  %v477_v15 = vmul.f32 0.33333334, %v469_v11 }
  0xd8   : > { %484 = vst.msk [vmem:[#allocation2 + $0x28] sm:$0xff] %vm478_vm1, %v475_v13 }
  0xd9   : > { %486 = vst.msk [vmem:[#allocation2 + $0x38] sm:$0xff] %vm478_vm1, %v477_v15 }
  0xda PF: > { %v1031_v16 = vld [vmem:[%s1372_s26 + $0x18] sm:$0xff]  ;;  %vm535_vm2 = vcmask 261120   ;;  %v1030_v18 = vld [vmem:[%s1372_s26 + $0x10] sm:$0xff]  ;;  %v1029_v20 = vld [vmem:[%s1372_s26 + $0x8] sm:$0xff]  ;;  %v975_v24 = vor.u32 %v1363_v2, %v1361_v0  ;;  %v979_v25 = vor.u32 %v1367_v6, %v1365_v4  ;;  %v983_v26 = vor.u32 %v1376_v10, %v1374_v8  ;;  %p1008_p1 = scmp.ne.s32.totalorder %s1228_s18, 1 }
  0xdb   : > { %v558_v17 = vsel %vm535_vm2, %v1031_v16, 0  ;;  %v555_v19 = vsel %vm535_vm2, %v1030_v18, 0  ;;  %v552_v21 = vsel %vm535_vm2, %v1029_v20, 0  ;;  %v1028_v22 = vld [vmem:[%s1372_s26] sm:$0xff]  ;;  %v987_v27 = vor.u32 %v1380_v14, %v1378_v12  ;;  %v591_v4 = vld [vmem:[#allocation2 + $0x10] sm:$0xff]  ;;  %v590_v42 = vld [vmem:[#allocation2 + $0x8] sm:$0xff] }
  0xdc   : > { %564 = vmatpush.bf16.xpose.msra.mxu0 %v558_v17  ;;  %1063 = vmatpush.bf16.xpose.msra.mxu1 %v558_v17  ;;  %v549_v23 = vsel %vm535_vm2, %v1028_v22, 0  ;;  %v589_v30 = vld [vmem:[#allocation2] sm:$0xff]  ;;  %vm621_vm3 = vcmask 523264   ;;  %v595_v37 = vld [vmem:[#allocation2 + $0x30] sm:$0xff]  ;;  %v592_v43 = vld [vmem:[#allocation2 + $0x18] sm:$0xff] }
  0xdd   : > { %1064 = vmatpush.bf16.xpose.msra.mxu2 %v558_v17  ;;  %1065 = vmatpush.bf16.xpose.msra.mxu3 %v558_v17  ;;  %v593_v36 = vld [vmem:[#allocation2 + $0x20] sm:$0xff] }
  0xdf   : > { %v594_v54 = vld [vmem:[#allocation2 + $0x28] sm:$0xff] }
  0xe0   : > { %v596_v55 = vld [vmem:[#allocation2 + $0x38] sm:$0xff] }
  0xe4   : > { %565 = vmatpush.bf16.xpose.msra.mxu0 %v555_v19  ;;  %1066 = vmatpush.bf16.xpose.msra.mxu1 %v555_v19 }
  0xe5   : > { %1067 = vmatpush.bf16.xpose.msra.mxu2 %v555_v19  ;;  %1068 = vmatpush.bf16.xpose.msra.mxu3 %v555_v19 }
  0xec   : > { %566 = vmatpush.bf16.xpose.msra.mxu0 %v552_v21  ;;  %1069 = vmatpush.bf16.xpose.msra.mxu1 %v552_v21 }
  0xed   : > { %1070 = vmatpush.bf16.xpose.msra.mxu2 %v552_v21  ;;  %1071 = vmatpush.bf16.xpose.msra.mxu3 %v552_v21 }
  0xf4   : > { %567 = vmatpush.bf16.xpose.msra.mxu0 %v549_v23  ;;  %1072 = vmatpush.bf16.xpose.msra.mxu1 %v549_v23 }
  0xf5   : > { %1073 = vmatpush.bf16.xpose.msra.mxu2 %v549_v23  ;;  %1074 = vmatpush.bf16.xpose.msra.mxu3 %v549_v23 }
  0xfb   : > { %1004 = vmatmul.msk.bf16.vlgmr.msra.gmra.mxu0 %vm535_vm2, %v975_v24  ;;  %1005 = vmatmul.msk.bf16.vlgmr.msra.gmra.mxu1 %vm535_vm2, %v979_v25 }
  0xfc   : > { %1006 = vmatmul.msk.bf16.vlgmr.msra.gmra.mxu2 %vm535_vm2, %v983_v26  ;;  %1007 = vmatmul.msk.bf16.vlgmr.msra.gmra.mxu3 %vm535_vm2, %v987_v27 }
 0x178   : > { %v569_v28 = vpop.f32.mrf.mxu0  ;;  %v574_v29 = vpop.f32.mrf.mxu1 }
 0x179   : > { %v597_v0 = vmax.f32 %v569_v28, 0.0  ;;  %v599_v2 = vmax.f32 %v574_v29, 0.0 }
 0x17b   : > { %v605_v6 = vmul.f32 0.16666667, %v597_v0  ;;  %v607_v31 = vmul.f32 0.16666667, %v599_v2 }
 0x17d   : > { %v613_v8 = vadd.f32 %v605_v6, %v589_v30  ;;  %v615_v10 = vadd.f32 %v607_v31, %v591_v4 }
 0x17f   : > { %622 = vst.msk [vmem:[#allocation2] sm:$0xff] %vm621_vm3, %v613_v8  ;;  %v579_v12 = vpop.f32.mrf.mxu2  ;;  %v584_v14 = vpop.f32.mrf.mxu3 }
 0x180   : > { %624 = vst.msk [vmem:[#allocation2 + $0x10] sm:$0xff] %vm621_vm3, %v615_v10  ;;  %v601_v32 = vmax.f32 %v579_v12, 0.0  ;;  %v603_v33 = vmax.f32 %v584_v14, 0.0  ;;  %v571_v34 = vpop.f32.mrf.mxu0  ;;  %v576_v35 = vpop.f32.mrf.mxu1 }
 0x181   : > { %v598_v38 = vmax.f32 %v571_v34, 0.0  ;;  %v600_v39 = vmax.f32 %v576_v35, 0.0 }
 0x182   : > { %v609_v40 = vmul.f32 0.16666667, %v601_v32  ;;  %v611_v41 = vmul.f32 0.16666667, %v603_v33 }
 0x183   : > { %v606_v44 = vmul.f32 0.16666667, %v598_v38  ;;  %v608_v45 = vmul.f32 0.16666667, %v600_v39 }
 0x184   : > { %v617_v46 = vadd.f32 %v609_v40, %v593_v36  ;;  %v619_v47 = vadd.f32 %v611_v41, %v595_v37 }
 0x185   : > { %v614_v48 = vadd.f32 %v606_v44, %v590_v42  ;;  %v616_v49 = vadd.f32 %v608_v45, %v592_v43 }
 0x186   : > { %626 = vst.msk [vmem:[#allocation2 + $0x20] sm:$0xff] %vm621_vm3, %v617_v46 }
 0x187   : > { %628 = vst.msk [vmem:[#allocation2 + $0x30] sm:$0xff] %vm621_vm3, %v619_v47  ;;  %v581_v50 = vpop.f32.mrf.mxu2  ;;  %v586_v51 = vpop.f32.mrf.mxu3 }
 0x188   : > { %623 = vst.msk [vmem:[#allocation2 + $0x8] sm:$0xff] %vm621_vm3, %v614_v48  ;;  %v602_v52 = vmax.f32 %v581_v50, 0.0  ;;  %v604_v53 = vmax.f32 %v586_v51, 0.0 }
 0x189   : > { %625 = vst.msk [vmem:[#allocation2 + $0x18] sm:$0xff] %vm621_vm3, %v616_v49 }
 0x18a   : > { %v610_v56 = vmul.f32 0.16666667, %v602_v52  ;;  %v612_v57 = vmul.f32 0.16666667, %v604_v53 }
 0x18b   : > { %633 = sbr.rel (%p1008_p1) target bundleno = 690 (0x2b2), region = 44 }
 0x18c   : > { %v618_v58 = vadd.f32 %v610_v56, %v594_v54  ;;  %v620_v59 = vadd.f32 %v612_v57, %v596_v55 }
 0x18e   : > { %627 = vst.msk [vmem:[#allocation2 + $0x28] sm:$0xff] %vm621_vm3, %v618_v58 }
 0x18f   : > { %629 = vst.msk [vmem:[#allocation2 + $0x38] sm:$0xff] %vm621_vm3, %v620_v59 }
 0x190   : > { %v638_v60 = vld [vmem:[#allocation2 + $0x20] sm:$0xff]  ;;  %v636_v1 = vld [vmem:[#allocation2 + $0x10] sm:$0xff]  ;;  %v635_v7 = vld [vmem:[#allocation2 + $0x8] sm:$0xff]  ;;  %v1246_v28 = vmov 64.0   ;;  %vm737_vm5 = vcmask 516096  }
 0x191   : > { %v634_v61 = vld [vmem:[#allocation2] sm:$0xff]  ;;  %v654_v62 = vsel %vm621_vm3, %v638_v60, 0.0  ;;  %v648_v3 = vsel %vm621_vm3, %v636_v1, 0.0  ;;  %v637_v9 = vld [vmem:[#allocation2 + $0x18] sm:$0xff]  ;;  %v645_v13 = vsel %vm621_vm3, %v635_v7, 0.0  ;;  %v640_v16 = vld [vmem:[#allocation2 + $0x30] sm:$0xff]  ;;  %1148 = vrcp.f32 %v1246_v28 }
 0x192   : > { %v642_v63 = vsel %vm621_vm3, %v634_v61, 0.0  ;;  %655 = vadd.xlane.f32.xlu2 %v654_v62  ;;  %649 = vadd.xlane.f32.xlu1 %v648_v3  ;;  %v651_v15 = vsel %vm621_vm3, %v637_v9, 0.0  ;;  %v681_v18 = vsel %vm621_vm3, %v634_v61, -inf  ;;  %v660_v19 = vsel %vm621_vm3, %v640_v16, 0.0 }
 0x193   : > { %643 = vadd.xlane.f32.xlu0 %v642_v63  ;;  %v684_v21 = vsel %vm621_vm3, %v635_v7, -inf  ;;  %v690_v22 = vsel %vm621_vm3, %v637_v9, -inf  ;;  %v687_v23 = vsel %vm621_vm3, %v636_v1, -inf  ;;  %v693_v24 = vsel %vm621_vm3, %v638_v60, -inf }
 0x194   : > { %v699_v25 = vsel %vm621_vm3, %v640_v16, -inf }
 0x195   : > { %v639_v5 = vld [vmem:[#allocation2 + $0x28] sm:$0xff] }
 0x196   : > { %v657_v11 = vsel %vm621_vm3, %v639_v5, 0.0  ;;  %v641_v17 = vld [vmem:[#allocation2 + $0x38] sm:$0xff]  ;;  %v696_v26 = vsel %vm621_vm3, %v639_v5, -inf }
 0x197   : > { %v663_v20 = vsel %vm621_vm3, %v641_v17, 0.0  ;;  %v702_v27 = vsel %vm621_vm3, %v641_v17, -inf  ;;  %v1149_v29 = vpop.eup %1148 }
 0x198   : > { %v667_v0 = vmul.f32 64.0, %v1149_v29  ;;  %vm671_vm4 = vweird.f32 %v1149_v29 }
 0x19a   : > { %658 = vadd.xlane.f32.xlu2 %v657_v11  ;;  %652 = vadd.xlane.f32.xlu1 %v651_v15  ;;  %v668_v2 = vsub.f32 1.0, %v667_v0 }
 0x19b   : > { %646 = vadd.xlane.f32.xlu0 %v645_v13 }
 0x19c   : > { %v669_v30 = vmul.f32 %v1149_v29, %v668_v2 }
 0x19e   : > { %v670_v4 = vadd.f32 %v1149_v29, %v669_v30 }
 0x1a0   : > { %v672_v6 = vsel %vm671_vm4, %v1149_v29, %v670_v4 }
 0x1a2   : > { %682 = vmax.xlane.f32.xlu2 %v681_v18  ;;  %664 = vadd.xlane.f32.xlu1 %v663_v20 }
 0x1a3   : > { %661 = vadd.xlane.f32.xlu0 %v660_v19 }
 0x1aa   : > { %691 = vmax.xlane.f32.xlu2 %v690_v22  ;;  %688 = vmax.xlane.f32.xlu1 %v687_v23 }
 0x1ab   : > { %685 = vmax.xlane.f32.xlu0 %v684_v21 }
 0x1b2   : > { %700 = vmax.xlane.f32.xlu2 %v699_v25  ;;  %697 = vmax.xlane.f32.xlu1 %v696_v26 }
 0x1b3   : > { %694 = vmax.xlane.f32.xlu0 %v693_v24 }
 0x1bb   : > { %703 = vmax.xlane.f32.xlu0 %v702_v27 }
 0x205   : > { %v656_v31 = vpop.xlane.xlu2 %655  ;;  %v650_v12 = vpop.xlane.xlu1 %649 }
 0x206   : > { %v644_v8 = vpop.xlane.xlu0 %643  ;;  %v675_v37 = vmul.f32 %v672_v6, %v650_v12  ;;  %v677_v42 = vmul.f32 %v672_v6, %v656_v31 }
 0x207   : > { %v673_v10 = vmul.f32 %v672_v6, %v644_v8 }
 0x209   : > { %705 = vxpose.xlu1.b32.start [1/8] (short) (narrow) %v673_v10, 8 }
 0x20d   : > { %v659_v14 = vpop.xlane.xlu2 %658  ;;  %v653_v34 = vpop.xlane.xlu1 %652 }
 0x20e   : > { %v647_v32 = vpop.xlane.xlu0 %646  ;;  %v676_v40 = vmul.f32 %v672_v6, %v653_v34  ;;  %v678_v44 = vmul.f32 %v672_v6, %v659_v14 }
 0x20f   : > { %v674_v33 = vmul.f32 %v672_v6, %v647_v32 }
 0x211   : > { %706 = vxpose.xlu1.b32.cont [2/8] (short) (narrow) %v674_v33, 8 }
 0x215   : > { %v683_v35 = vpop.xlane.xlu2 %682  ;;  %v665_v38 = vpop.xlane.xlu1 %664 }
 0x216   : > { %v662_v36 = vpop.xlane.xlu0 %661  ;;  %739 = vxpose.xlu2.b32.start [1/8] (short) (narrow) %v683_v35, 8  ;;  %v680_v48 = vmul.f32 %v672_v6, %v665_v38 }
 0x217   : > { %v679_v46 = vmul.f32 %v672_v6, %v662_v36 }
 0x219   : > { %707 = vxpose.xlu1.b32.cont [3/8] (short) (narrow) %v675_v37, 8 }
 0x21d   : > { %v689_v41 = vpop.xlane.xlu1 %688  ;;  %v692_v43 = vpop.xlane.xlu2 %691 }
 0x21e   : > { %v686_v39 = vpop.xlane.xlu0 %685 }
 0x21f   : > { %740 = vxpose.xlu2.b32.cont [2/8] (short) (narrow) %v686_v39, 8 }
 0x221   : > { %708 = vxpose.xlu1.b32.cont [4/8] (short) (narrow) %v676_v40, 8 }
 0x225   : > { %v698_v47 = vpop.xlane.xlu1 %697  ;;  %v701_v49 = vpop.xlane.xlu2 %700 }
 0x226   : > { %v695_v45 = vpop.xlane.xlu0 %694 }
 0x227   : > { %741 = vxpose.xlu2.b32.cont [3/8] (short) (narrow) %v689_v41, 8 }
 0x229   : > { %709 = vxpose.xlu1.b32.cont [5/8] (short) (narrow) %v677_v42, 8 }
 0x22e   : > { %v704_v50 = vpop.xlane.xlu0 %703 }
 0x22f   : > { %742 = vxpose.xlu2.b32.cont [4/8] (short) (narrow) %v692_v43, 8 }
 0x231   : > { %710 = vxpose.xlu1.b32.cont [6/8] (short) (narrow) %v678_v44, 8 }
 0x237   : > { %743 = vxpose.xlu2.b32.cont [5/8] (short) (narrow) %v695_v45, 8 }
 0x239   : > { %711 = vxpose.xlu1.b32.cont [7/8] (short) (narrow) %v679_v46, 8 }
 0x23f   : > { %744 = vxpose.xlu2.b32.cont [6/8] (short) (narrow) %v698_v47, 8 }
 0x241   : > { %712 = vxpose.xlu1.b32.end [8/8] (short) (narrow) %v680_v48, 8 }
 0x247   : > { %745 = vxpose.xlu2.b32.cont [7/8] (short) (narrow) %v701_v49, 8 }
 0x24f   : > { %746 = vxpose.xlu2.b32.end [8/8] (short) (narrow) %v704_v50, 8 }
 0x2ad   : > { %v721_v51 = vpop.trf.xlu1 }
 0x2ae   : > { %738 = vst.msk [vmem:[%s1382_s21] sm:$0x1] %vm737_vm5, %v721_v51 }
 0x2b0   : > { %v755_v52 = vpop.trf.xlu2 }
 0x2b1   : > { %771 = vst.msk [vmem:[%s1382_s21 + $0x1] sm:$0x1] %vm737_vm5, %v755_v52 }
 0x2b2 PF: > { %s1010_s18 = sshll.u32 %s1232_s19, 1  ;;  %s786_s9 = sshll.u32 %s1382_s21, 4  ;;  %s787_s9 = int_to_ptr.vmem [resolvable:$true] %s786_s9 }
 0x2b3   : > { %s784_s7 = scalar_lea.hbm %s1505_s4, %s1010_s18  ;;  %s1514_s11 = sand.u32 1, %s1220_s16  }
 0x2b4   : > { %s788_s10 = sshll.u32 %s784_s7, 4  ;;  %s773_s14 = scalar_lea.sflag [#allocation4], %s1514_s11  ;;  %s789_s10 = int_to_ptr.hbm [resolvable:$true] %s788_s10 }
 0x2b5   : > { %s1164_s23 = sshra.s32 %s789_s10, 4  ;;  %s1170_s19 = scalar_lea.hbm %s1505_s4, 4  ;;  %s1165_s23 = int_to_ptr.hbm [resolvable:$true] %s1164_s23 }
 0x2b6   : > { %s1166_s24 = scalar_lea.hbm %s1165_s23, 2  ;;  %p1171_p6 = scmp.lt.s32.totalorder %s1165_s23, %s1505_s4 }
 0x2b7   : > { %p1167_p2 = scmp.ne.s32.totalorder %s1165_s23, %s1166_s24  ;;  %p1172_p7 = scmp.lt.s32.totalorder %s1170_s19, %s1166_s24 }
 0x2b9   : > { %p1168_p4 = pnand %p1167_p2, %p1321_p3  ;;  %p1173_p8 = por %p1172_p7, %p1171_p6 }
 0x2bb   : > { %p1169_p5 = pneg %p1168_p4 }
 0x2bd   : > { %p1174_p10 = pnand %p1173_p8, %p1169_p5 }
 0x2bf   : > { %1177 = shalt.err (!%p1174_p10)
}
 0x2c0   : > { %1075 = dma.vmem_to_hbm [thread:$0]  (%p1321_p3), %s787_s9, 32, %s789_s10, %s773_s14  }
 0x2c1 PF: > { %p1081_p11 = scmp.ge.s32.totalorder %s1244_s22, 2  ;;  %s800_s13 = sand.u32 1, %s1216_s15  }
 0x2c2   : > { %s801_s26 = scalar_lea.sflag [#allocation4], %s800_s13 }
 0x2c3   : > { %p1078_p12 = pnand %p1081_p11, %p1331_p9 }
 0x2c5   : > { %p1079_p13 = pneg %p1078_p12 }
 0x2c7   : > { %1211 = dma.done.wait (%p1079_p13), %s801_s26, 32  }
 0x2c8   : > { %1213 = vsyncadd (%p1079_p13), %s801_s26, 4294967264  ;;  %s17_s22 = sadd.s32 1, %s1244_s22   ;;  %s1515_s19 = sld [smem:[#allocation6_spill]] }
 0x2c9   : > { %p14_p0 = scmp.ge.s32.totalorder %s17_s22, 6   ;;  %s1516_s27 = sld [smem:[#allocation7_spill]] }
 0x2ca   : > { %s1517_s21 = sld [smem:[#allocation8_spill]]  ;;  %s1518_s15 = smov %s1220_s16 }
 0x2cb   : > { %s1519_s16 = smov %s1224_s17  ;;  %s1520_s17 = smov %s1339_s5 }
 0x2cc   : > { %s1521_s18 = smov %s1236_s20  ;;  %16 = sbr.rel (!%p14_p0) target bundleno = 5 (0x5), region = 88 }
 0x2cf   : > { %s1522_s20 = smov %s1516_s27 }
 0x2d1   :  { %807 = vsyncpa [#allocation4], 1 }
 0x2d2   :  { %809 = vsyncpa [#allocation4 + $0x1], 1 }

</bundles_post_ra>
